<compile_context>
chip_gen: v7x
topology: tpu7x:2x2x1
jax: 0.10.0
libtpu: 0.0.40
codegen_flags: <defaults>
</compile_context>

<pallas_src>
import jax
import jax.numpy as jnp
from jax.experimental import pallas as pl
from jax.experimental.pallas import tpu as pltpu

N, C_IN, C_OUT, L_IN, K, PAD = 120, 2, 1, 27, 5, 2
L_OUT = (L_IN - 1) - 2 * PAD + K  # = 27   (stride=1)


def conv_t_sigmoid_kernel(x_ref, w_ref, b_ref, o_ref):
    # x_ref: (C_IN, L_IN + 2*PAD, N) f32 VMEM  -- padded input, N on lanes
    # w_ref: (C_IN * K,)             f32 SMEM  -- PyTorch weight order (unflipped)
    # b_ref: (1,)                    f32 SMEM
    # o_ref: (L_OUT, N)              f32 VMEM  -- lane-dense output
    l_out, n = o_ref.shape
    c_in = x_ref.shape[0]
    k = w_ref.shape[0] // c_in

    acc = jnp.full((l_out, n), b_ref[0], dtype=jnp.float32)
    for c in range(c_in):                 # C_IN = 2, static unroll
        for t in range(k):                # K    = 5, static unroll
            # transposed conv == correlation with the flipped kernel;
            # the flip is fused into the SMEM index (k - 1 - t).
            acc = acc + x_ref[c, t:t + l_out, :] * w_ref[c * k + (k - 1 - t)]
    o_ref[...] = jax.nn.sigmoid(acc)


def conv_t_sigmoid(x, weight, bias):
    """x: (N, C_IN, L_IN) f32; weight: (C_IN, C_OUT, 1, K) f32; bias: (C_OUT,) f32."""
    # Pad + relayout to (C_IN, L_pad, N) in one XLA fusion: N becomes the lane axis.
    x_cln = jnp.pad(x, ((0, 0), (0, 0), (PAD, PAD))).transpose(1, 2, 0)  # (2, 31, 120)
    w_flat = weight.reshape(C_IN * K)  # (10,) -- free reshape; flip happens in-kernel

    out_ln = pl.pallas_call(
        conv_t_sigmoid_kernel,
        out_shape=jax.ShapeDtypeStruct((L_OUT, N), jnp.float32),
        in_specs=[
            pl.BlockSpec(memory_space=pltpu.MemorySpace.VMEM),   # x (padded, relaid)
            pl.BlockSpec(memory_space=pltpu.MemorySpace.SMEM),   # flat weight
            pl.BlockSpec(memory_space=pltpu.MemorySpace.SMEM),   # bias
        ],
        out_specs=pl.BlockSpec(memory_space=pltpu.MemorySpace.VMEM),
    )(x_cln, w_flat, bias)

    # Back to the module's NCL output layout (free reshapes/transposes in XLA).
    return out_ln.T[:, None, :]  # (N, C_OUT, L_OUT)


def reference_conv_transpose1d_sigmoid(x, weight, bias):
    """Independent reference: direct scatter definition of ConvTranspose1d
    (out[j] += x[i] * w[k] where j = i*stride - padding + k), stride=1, pad=2.
    Does NOT use the pad+flip rewrite the kernel uses."""
    w = weight.reshape(C_IN, K)  # (C_IN, K); C_OUT == 1
    out = jnp.full((N, L_OUT), bias[0], dtype=jnp.float32)
    for i in range(L_IN):
        for k in range(K):
            j = i - PAD + k
            if 0 <= j < L_OUT:
                out = out.at[:, j].add(x[:, :, i] @ w[:, k])
    return jax.nn.sigmoid(out)[:, None, :]


if __name__ == "__main__":
    key = jax.random.PRNGKey(0)
    kx, kw, kb = jax.random.split(key, 3)

    # Deterministic parameter init mirroring the PyTorch module's
    # ConvTranspose1d weight (C_in, C_out, 1, K) and bias (C_out,).
    bound = 1.0 / jnp.sqrt(jnp.float32(C_IN * K))
    weight = jax.random.uniform(kw, (C_IN, C_OUT, 1, K), jnp.float32, -bound, bound)
    bias = jax.random.uniform(kb, (C_OUT,), jnp.float32, -bound, bound)

    x = jax.random.normal(kx, (N, C_IN, L_IN), dtype=jnp.float32)

    fwd = jax.jit(conv_t_sigmoid)
    out = jax.block_until_ready(fwd(x, weight, bias))
    ref = reference_conv_transpose1d_sigmoid(x, weight, bias)

    assert out.shape == (N, C_OUT, L_OUT), out.shape
    assert jnp.allclose(out, ref, atol=1e-5, rtol=1e-5), "mismatch vs independent reference"
    print("KERNEL_OK")
</pallas_src>

<mosaic_0001>
module attributes {stable_mosaic.version = 11 : i64} {
  func.func @conv_t_sigmoid_kernel(%arg0: memref<2x31x120xf32, #tpu.memory_space<vmem>>, %arg1: memref<10xf32, #tpu.memory_space<smem>>, %arg2: memref<1xf32, #tpu.memory_space<smem>>, %arg3: memref<27x120xf32, #tpu.memory_space<vmem>>) attributes {dimension_semantics = [], scalar_prefetch = 0 : i64, scratch_operands = 0 : i64, tpu.core_type = #tpu.core_type<tc>} {
    %c0 = arith.constant 0 : index
    %0 = memref.load %arg2[%c0] : memref<1xf32, #tpu.memory_space<smem>>
    %1 = vector.broadcast %0 : f32 to vector<27x120xf32>
    %c0_0 = arith.constant 0 : index
    %c0_1 = arith.constant 0 : index
    %c0_2 = arith.constant 0 : index
    %2 = vector.load %arg0[%c0_0, %c0_1, %c0_2] : memref<2x31x120xf32, #tpu.memory_space<vmem>>, vector<1x27x120xf32>
    %3 = vector.shape_cast %2 : vector<1x27x120xf32> to vector<27x120xf32>
    %c4 = arith.constant 4 : index
    %4 = memref.load %arg1[%c4] : memref<10xf32, #tpu.memory_space<smem>>
    %5 = vector.broadcast %4 : f32 to vector<27x120xf32>
    %6 = arith.mulf %3, %5 : vector<27x120xf32>
    %7 = arith.addf %1, %6 : vector<27x120xf32>
    %c0_3 = arith.constant 0 : index
    %c1 = arith.constant 1 : index
    %c0_4 = arith.constant 0 : index
    %8 = vector.load %arg0[%c0_3, %c1, %c0_4] : memref<2x31x120xf32, #tpu.memory_space<vmem>>, vector<1x27x120xf32>
    %9 = vector.shape_cast %8 : vector<1x27x120xf32> to vector<27x120xf32>
    %c3 = arith.constant 3 : index
    %10 = memref.load %arg1[%c3] : memref<10xf32, #tpu.memory_space<smem>>
    %11 = vector.broadcast %10 : f32 to vector<27x120xf32>
    %12 = arith.mulf %9, %11 : vector<27x120xf32>
    %13 = arith.addf %7, %12 : vector<27x120xf32>
    %c0_5 = arith.constant 0 : index
    %c2 = arith.constant 2 : index
    %c0_6 = arith.constant 0 : index
    %14 = vector.load %arg0[%c0_5, %c2, %c0_6] : memref<2x31x120xf32, #tpu.memory_space<vmem>>, vector<1x27x120xf32>
    %15 = vector.shape_cast %14 : vector<1x27x120xf32> to vector<27x120xf32>
    %c2_7 = arith.constant 2 : index
    %16 = memref.load %arg1[%c2_7] : memref<10xf32, #tpu.memory_space<smem>>
    %17 = vector.broadcast %16 : f32 to vector<27x120xf32>
    %18 = arith.mulf %15, %17 : vector<27x120xf32>
    %19 = arith.addf %13, %18 : vector<27x120xf32>
    %c0_8 = arith.constant 0 : index
    %c3_9 = arith.constant 3 : index
    %c0_10 = arith.constant 0 : index
    %20 = vector.load %arg0[%c0_8, %c3_9, %c0_10] : memref<2x31x120xf32, #tpu.memory_space<vmem>>, vector<1x27x120xf32>
    %21 = vector.shape_cast %20 : vector<1x27x120xf32> to vector<27x120xf32>
    %c1_11 = arith.constant 1 : index
    %22 = memref.load %arg1[%c1_11] : memref<10xf32, #tpu.memory_space<smem>>
    %23 = vector.broadcast %22 : f32 to vector<27x120xf32>
    %24 = arith.mulf %21, %23 : vector<27x120xf32>
    %25 = arith.addf %19, %24 : vector<27x120xf32>
    %c0_12 = arith.constant 0 : index
    %c4_13 = arith.constant 4 : index
    %c0_14 = arith.constant 0 : index
    %26 = vector.load %arg0[%c0_12, %c4_13, %c0_14] : memref<2x31x120xf32, #tpu.memory_space<vmem>>, vector<1x27x120xf32>
    %27 = vector.shape_cast %26 : vector<1x27x120xf32> to vector<27x120xf32>
    %c0_15 = arith.constant 0 : index
    %28 = memref.load %arg1[%c0_15] : memref<10xf32, #tpu.memory_space<smem>>
    %29 = vector.broadcast %28 : f32 to vector<27x120xf32>
    %30 = arith.mulf %27, %29 : vector<27x120xf32>
    %31 = arith.addf %25, %30 : vector<27x120xf32>
    %c1_16 = arith.constant 1 : index
    %c0_17 = arith.constant 0 : index
    %c0_18 = arith.constant 0 : index
    %32 = vector.load %arg0[%c1_16, %c0_17, %c0_18] : memref<2x31x120xf32, #tpu.memory_space<vmem>>, vector<1x27x120xf32>
    %33 = vector.shape_cast %32 : vector<1x27x120xf32> to vector<27x120xf32>
    %c9 = arith.constant 9 : index
    %34 = memref.load %arg1[%c9] : memref<10xf32, #tpu.memory_space<smem>>
    %35 = vector.broadcast %34 : f32 to vector<27x120xf32>
    %36 = arith.mulf %33, %35 : vector<27x120xf32>
    %37 = arith.addf %31, %36 : vector<27x120xf32>
    %c1_19 = arith.constant 1 : index
    %c1_20 = arith.constant 1 : index
    %c0_21 = arith.constant 0 : index
    %38 = vector.load %arg0[%c1_19, %c1_20, %c0_21] : memref<2x31x120xf32, #tpu.memory_space<vmem>>, vector<1x27x120xf32>
    %39 = vector.shape_cast %38 : vector<1x27x120xf32> to vector<27x120xf32>
    %c8 = arith.constant 8 : index
    %40 = memref.load %arg1[%c8] : memref<10xf32, #tpu.memory_space<smem>>
    %41 = vector.broadcast %40 : f32 to vector<27x120xf32>
    %42 = arith.mulf %39, %41 : vector<27x120xf32>
    %43 = arith.addf %37, %42 : vector<27x120xf32>
    %c1_22 = arith.constant 1 : index
    %c2_23 = arith.constant 2 : index
    %c0_24 = arith.constant 0 : index
    %44 = vector.load %arg0[%c1_22, %c2_23, %c0_24] : memref<2x31x120xf32, #tpu.memory_space<vmem>>, vector<1x27x120xf32>
    %45 = vector.shape_cast %44 : vector<1x27x120xf32> to vector<27x120xf32>
    %c7 = arith.constant 7 : index
    %46 = memref.load %arg1[%c7] : memref<10xf32, #tpu.memory_space<smem>>
    %47 = vector.broadcast %46 : f32 to vector<27x120xf32>
    %48 = arith.mulf %45, %47 : vector<27x120xf32>
    %49 = arith.addf %43, %48 : vector<27x120xf32>
    %c1_25 = arith.constant 1 : index
    %c3_26 = arith.constant 3 : index
    %c0_27 = arith.constant 0 : index
    %50 = vector.load %arg0[%c1_25, %c3_26, %c0_27] : memref<2x31x120xf32, #tpu.memory_space<vmem>>, vector<1x27x120xf32>
    %51 = vector.shape_cast %50 : vector<1x27x120xf32> to vector<27x120xf32>
    %c6 = arith.constant 6 : index
    %52 = memref.load %arg1[%c6] : memref<10xf32, #tpu.memory_space<smem>>
    %53 = vector.broadcast %52 : f32 to vector<27x120xf32>
    %54 = arith.mulf %51, %53 : vector<27x120xf32>
    %55 = arith.addf %49, %54 : vector<27x120xf32>
    %c1_28 = arith.constant 1 : index
    %c4_29 = arith.constant 4 : index
    %c0_30 = arith.constant 0 : index
    %56 = vector.load %arg0[%c1_28, %c4_29, %c0_30] : memref<2x31x120xf32, #tpu.memory_space<vmem>>, vector<1x27x120xf32>
    %57 = vector.shape_cast %56 : vector<1x27x120xf32> to vector<27x120xf32>
    %c5 = arith.constant 5 : index
    %58 = memref.load %arg1[%c5] : memref<10xf32, #tpu.memory_space<smem>>
    %59 = vector.broadcast %58 : f32 to vector<27x120xf32>
    %60 = arith.mulf %57, %59 : vector<27x120xf32>
    %61 = arith.addf %55, %60 : vector<27x120xf32>
    %62 = arith.negf %61 : vector<27x120xf32>
    %63 = math.exp %62 : vector<27x120xf32>
    %cst = arith.constant 1.000000e+00 : f32
    %64 = vector.broadcast %cst : f32 to vector<27x120xf32>
    %65 = arith.addf %64, %63 : vector<27x120xf32>
    %66 = arith.divf %64, %65 : vector<27x120xf32>
    %c0_31 = arith.constant 0 : index
    %c0_32 = arith.constant 0 : index
    %67 = vector.load %arg3[%c0_31, %c0_32] : memref<27x120xf32, #tpu.memory_space<vmem>>, vector<27x120xf32>
    tpu.vector_store %arg3[%c0_31, %c0_32], %66 {strides = array<i32>} : memref<27x120xf32, #tpu.memory_space<vmem>>, vector<27x120xf32>,
    return
  }
}

</mosaic_0001>

<bundles_post_ra>
// kernel: conv_t_sigmoid.1
= control target key start
LH: loop header
LB: loop body
LE: loop exit
PB: predicated region body
PF: predicated region fallthrough
CT: control target
= control target key end

     0   :  { %9 = vsyncpa [#allocation4], 0  ;;  %s501_s0 = inlined_call_operand.vmem [shape: f32[2,31,120], index: 0, kind: input, shape index: {}]   ;;  %s502_s1 = inlined_call_operand.vmem [shape: f32[10], index: 1, kind: input, shape index: {}]   ;;  %s503_s2 = inlined_call_operand.<no memory space> [shape: f32[1], index: 2, kind: input, shape index: {}]   ;;  %s504_s3 = inlined_call_operand.vmem [shape: f32[27,120], index: 3, kind: output, shape index: {}]  }
   0x1   :  { %s18_s14 = sshll.u32 %s502_s1, 4  ;;  %s19_s14 = int_to_ptr.vmem [resolvable:$true] %s18_s14 }
   0x2   :  { %s256_s15 = scalar_lea.vmem %s19_s14, 16  ;;  %p261_p1 = scmp.lt.s32.totalorder %s19_s14, %s19_s14 }
   0x3   :  { %p257_p0 = scmp.ne.s32.totalorder %s19_s14, %s256_s15  ;;  %p262_p2 = scmp.lt.s32.totalorder %s256_s15, %s256_s15 }
   0x5   :  { %p263_p3 = por %p262_p2, %p261_p1 }
   0x7   :  { %p264_p4 = pnand %p263_p3, %p257_p0 }
   0x9   :  { %267 = shalt.err (!%p264_p4)
}
   0xa   :  { %s270_s16 = smov [#allocation3]  }
   0xb   :  { %21 = dma.vmem_to_smem %s19_s14, 16, %s270_s16, [#allocation4]  }
   0xc   :  { %268 = dma.done.wait [#allocation4], 16  }
   0xd   :  { %269 = vsyncadd [#allocation4], 4294967280 }
   0xe   :  { %27 = sfence }
   0xf   :  { %s206_s17 = sld [smem:[#allocation3 + $0x4]]  ;;  %s207_s18 = sld [smem:[#allocation3 + $0x3]]  ;;  %v30_v0 = vld [vmem:[%s501_s0] sm:$0xff]  ;;  %v305_v2 = vstv %s503_s2  ;;  %v31_v13 = vld [vmem:[%s501_s0 + $0x8] sm:$0xff]  ;;  %v32_v24 = vld [vmem:[%s501_s0 + $0x10] sm:$0xff]  ;;  %vm195_vm0 = vcmask 982016  }
  0x10   :  { %s208_s19 = sld [smem:[#allocation3 + $0x2]]  ;;  %s209_s20 = sld [smem:[#allocation3 + $0x1]]  ;;  %v44_v1 = vld [vmem:[%s501_s0 + $0x1] sm:$0xff]  ;;  %v45_v14 = vld [vmem:[%s501_s0 + $0x9] sm:$0xff]  ;;  %v46_v25 = vld [vmem:[%s501_s0 + $0x11] sm:$0xff]  ;;  %vm199_vm1 = vcmask 976896  }
  0x11   :  { %s90_s21 = sld [smem:[#allocation3]]  ;;  %s214_s22 = sld [smem:[#allocation3 + $0x9]]  ;;  %v58_v5 = vld [vmem:[%s501_s0 + $0x2] sm:$0xff]  ;;  %v59_v21 = vld [vmem:[%s501_s0 + $0xa] sm:$0xff]  ;;  %v60_v34 = vld [vmem:[%s501_s0 + $0x12] sm:$0xff] }
  0x12   :  { %s300_s26 = sld [smem:[#allocation3 + $0x8]]  ;;  %s315_s4 = sld [smem:[#allocation3 + $0x7]]  ;;  %v72_v9 = vld [vmem:[%s501_s0 + $0x3] sm:$0xff]  ;;  %v73_v30 = vld [vmem:[%s501_s0 + $0xb] sm:$0xff]  ;;  %v33_v41 = vld [vmem:[%s501_s0 + $0x18] sm:$0x7] }
  0x13   :  { %s322_s2 = sld [smem:[#allocation3 + $0x6]]  ;;  %s326_s7 = sld [smem:[#allocation3 + $0x5]]  ;;  %v86_v15 = vld [vmem:[%s501_s0 + $0x4] sm:$0xff]  ;;  %v87_v38 = vld [vmem:[%s501_s0 + $0xc] sm:$0xff]  ;;  %v47_v47 = vld [vmem:[%s501_s0 + $0x19] sm:$0x7] }
  0x14   :  { %v210_v19 = vld [vmem:[%s501_s0 + $0x20] sm:$0xff]  ;;  %v74_v46 = vld [vmem:[%s501_s0 + $0x13] sm:$0xff]  ;;  %v211_v50 = vld [vmem:[%s501_s0 + $0x28] sm:$0xff] }
  0x15   :  { %v35_v3 = vstv %s206_s17  ;;  %v307_v4 = vstv %s207_s18  ;;  %v215_v28 = vld [vmem:[%s501_s0 + $0x21] sm:$0xff]  ;;  %v61_v53 = vld [vmem:[%s501_s0 + $0x1a] sm:$0x7] }
  0x16   :  { %v36_v6 = vmul.f32 %v35_v3, %v30_v0  ;;  %v50_v7 = vmul.f32 %v307_v4, %v44_v1  ;;  %v313_v8 = vstv %s208_s19  ;;  %v320_v10 = vstv %s209_s20  ;;  %v220_v36 = vld [vmem:[%s501_s0 + $0x22] sm:$0xff]  ;;  %v88_v58 = vld [vmem:[%s501_s0 + $0x14] sm:$0xff] }
  0x17   :  { %v64_v12 = vmul.f32 %v313_v8, %v58_v5  ;;  %v337_v16 = vstv %s90_s21  ;;  %v78_v18 = vmul.f32 %v320_v10, %v72_v9  ;;  %v343_v20 = vstv %s214_s22  ;;  %v225_v55 = vld [vmem:[%s501_s0 + $0x23] sm:$0xff]  ;;  %v75_v1 = vld [vmem:[%s501_s0 + $0x1b] sm:$0x7] }
  0x18   :  { %v40_v11 = vadd.f32 %v36_v6, %v305_v2  ;;  %v37_v22 = vmul.f32 %v35_v3, %v31_v13  ;;  %v51_v23 = vmul.f32 %v307_v4, %v45_v14  ;;  %v92_v27 = vmul.f32 %v337_v16, %v86_v15  ;;  %v216_v61 = vld [vmem:[%s501_s0 + $0x29] sm:$0xff] }
  0x19   :  { %v360_v29 = vstv %s300_s26  ;;  %v107_v31 = vmul.f32 %v210_v19, %v343_v20  ;;  %v65_v33 = vmul.f32 %v313_v8, %v59_v21  ;;  %v375_v37 = vstv %s315_s4  ;;  %v230_v5 = vld [vmem:[%s501_s0 + $0x24] sm:$0xff] }
  0x1a   :  { %v54_v17 = vadd.f32 %v50_v7, %v40_v11  ;;  %v41_v32 = vadd.f32 %v37_v22, %v305_v2  ;;  %v38_v39 = vmul.f32 %v35_v3, %v32_v24  ;;  %v52_v40 = vmul.f32 %v307_v4, %v46_v25  ;;  %v212_v7 = vld [vmem:[%s501_s0 + $0x30] sm:$0xff] }
  0x1b   :  { %v121_v42 = vmul.f32 %v215_v28, %v360_v29  ;;  %v386_v43 = vstv %s322_s2  ;;  %v79_v45 = vmul.f32 %v320_v10, %v73_v30  ;;  %v396_v49 = vstv %s326_s7  ;;  %v221_v13 = vld [vmem:[%s501_s0 + $0x2a] sm:$0xff] }
  0x1c   :  { %v68_v26 = vadd.f32 %v64_v12, %v54_v17  ;;  %v55_v44 = vadd.f32 %v51_v23, %v41_v32  ;;  %v42_v51 = vadd.f32 %v38_v39, %v305_v2  ;;  %v66_v52 = vmul.f32 %v313_v8, %v60_v34  ;;  %v89_v17 = vld [vmem:[%s501_s0 + $0x1c] sm:$0x7]  ;;  %v226_v24 = vld [vmem:[%s501_s0 + $0x2b] sm:$0xff] }
  0x1d   :  { %v135_v54 = vmul.f32 %v220_v36, %v375_v37  ;;  %v93_v57 = vmul.f32 %v337_v16, %v87_v38  ;;  %v39_v59 = vmul.f32 %v35_v3, %v33_v41  ;;  %v80_v63 = vmul.f32 %v320_v10, %v74_v46  ;;  %v231_v34 = vld [vmem:[%s501_s0 + $0x2c] sm:$0xff]  ;;  %v218_v38 = vld [vmem:[%s501_s0 + $0x39] sm:$0x7] }
  0x1e   :  { %v82_v35 = vadd.f32 %v78_v18, %v68_v26  ;;  %v69_v56 = vadd.f32 %v65_v33, %v55_v44  ;;  %v56_v62 = vadd.f32 %v52_v40, %v42_v51  ;;  %v53_v0 = vmul.f32 %v307_v4, %v47_v47  ;;  %v227_v41 = vld [vmem:[%s501_s0 + $0x33] sm:$0xff] }
  0x1f   :  { %v108_v3 = vmul.f32 %v211_v50, %v343_v20  ;;  %v43_v9 = vadd.f32 %v39_v59, %v305_v2  ;;  %v67_v11 = vmul.f32 %v313_v8, %v61_v53  ;;  %v149_v12 = vmul.f32 %v225_v55, %v386_v43  ;;  %v217_v2 = vld [vmem:[%s501_s0 + $0x31] sm:$0xff]  ;;  %v223_v47 = vld [vmem:[%s501_s0 + $0x3a] sm:$0x7] }
  0x20   :  { %v96_v48 = vadd.f32 %v92_v27, %v82_v35  ;;  %v83_v6 = vadd.f32 %v79_v45, %v69_v56  ;;  %v70_v14 = vadd.f32 %v66_v52, %v56_v62  ;;  %v94_v15 = vmul.f32 %v337_v16, %v88_v58  ;;  %v213_v27 = vld [vmem:[%s501_s0 + $0x38] sm:$0x7]  ;;  %v228_v56 = vld [vmem:[%s501_s0 + $0x3b] sm:$0x7] }
  0x21   :  { %v122_v19 = vmul.f32 %v216_v61, %v360_v29  ;;  %v57_v8 = vadd.f32 %v53_v0, %v43_v9  ;;  %v81_v21 = vmul.f32 %v320_v10, %v75_v1  ;;  %v163_v23 = vmul.f32 %v230_v5, %v396_v49  ;;  %v222_v10 = vld [vmem:[%s501_s0 + $0x32] sm:$0xff] }
  0x22   :  { %v111_v60 = vadd.f32 %v107_v31, %v96_v48  ;;  %v97_v18 = vadd.f32 %v93_v57, %v83_v6  ;;  %v84_v25 = vadd.f32 %v80_v63, %v70_v14  ;;  %v109_v26 = vmul.f32 %v212_v7, %v343_v20  ;;  %v232_v51 = vld [vmem:[%s501_s0 + $0x34] sm:$0xff] }
  0x23   :  { %v136_v30 = vmul.f32 %v221_v13, %v375_v37  ;;  %v71_v31 = vadd.f32 %v67_v11, %v57_v8  ;;  %v95_v32 = vmul.f32 %v337_v16, %v89_v17  ;;  %v123_v36 = vmul.f32 %v217_v2, %v360_v29 }
  0x24   :  { %v125_v4 = vadd.f32 %v121_v42, %v111_v60  ;;  %v112_v28 = vadd.f32 %v108_v3, %v97_v18  ;;  %v98_v35 = vadd.f32 %v94_v15, %v84_v25  ;;  %v150_v40 = vmul.f32 %v226_v24, %v386_v43 }
  0x25   :  { %v85_v16 = vadd.f32 %v81_v21, %v71_v31  ;;  %v110_v42 = vmul.f32 %v213_v27, %v343_v20  ;;  %v137_v46 = vmul.f32 %v222_v10, %v375_v37  ;;  %v164_v50 = vmul.f32 %v231_v34, %v396_v49 }
  0x26   :  { %v139_v22 = vadd.f32 %v135_v54, %v125_v4  ;;  %v126_v39 = vadd.f32 %v122_v19, %v112_v28  ;;  %v113_v45 = vadd.f32 %v109_v26, %v98_v35  ;;  %v124_v53 = vmul.f32 %v218_v38, %v360_v29  ;;  %v233_v29 = vld [vmem:[%s501_s0 + $0x3c] sm:$0x7] }
  0x27   :  { %v99_v52 = vadd.f32 %v95_v32, %v85_v16  ;;  %v151_v55 = vmul.f32 %v227_v41, %v386_v43  ;;  %v138_v59 = vmul.f32 %v223_v47, %v375_v37  ;;  %v165_v61 = vmul.f32 %v232_v51, %v396_v49 }
  0x28   :  { %v153_v33 = vadd.f32 %v149_v12, %v139_v22  ;;  %v140_v48 = vadd.f32 %v136_v30, %v126_v39  ;;  %v127_v20 = vadd.f32 %v123_v36, %v113_v45  ;;  %v152_v0 = vmul.f32 %v228_v56, %v386_v43 }
  0x29   :  { %v114_v58 = vadd.f32 %v110_v42, %v99_v52  ;;  %v166_v3 = vmul.f32 %v233_v29, %v396_v49 }
  0x2a   :  { %v167_v44 = vadd.f32 %v163_v23, %v153_v33  ;;  %v154_v57 = vadd.f32 %v150_v40, %v140_v48  ;;  %v141_v60 = vadd.f32 %v137_v46, %v127_v20 }
  0x2b   :  { %v128_v63 = vadd.f32 %v124_v53, %v114_v58 }
  0x2c   :  { %v235_v54 = vmul.f32 -1.442695, %v167_v44  ;;  %v168_v62 = vadd.f32 %v164_v50, %v154_v57  ;;  %v155_v1 = vadd.f32 %v151_v55, %v141_v60 }
  0x2d   :  { %v142_v6 = vadd.f32 %v138_v59, %v128_v63 }
  0x2e   :  { %240 = vpow2.f32 %v235_v54  ;;  %v236_v5 = vmul.f32 -1.442695, %v168_v62  ;;  %v169_v7 = vadd.f32 %v165_v61, %v155_v1 }
  0x2f   :  { %v156_v37 = vadd.f32 %v152_v0, %v142_v6 }
  0x30   :  { %242 = vpow2.f32 %v236_v5  ;;  %v237_v9 = vmul.f32 -1.442695, %v169_v7 }
  0x31   :  { %v170_v11 = vadd.f32 %v166_v3, %v156_v37 }
  0x32   :  { %244 = vpow2.f32 %v237_v9 }
  0x33   :  { %v238_v4 = vmul.f32 -1.442695, %v170_v11 }
  0x35   :  { %246 = vpow2.f32 %v238_v4 }
  0x38   :  { %v241_v12 = vpop.eup %240 }
  0x39   :  { %v183_v13 = vadd.f32 1.0, %v241_v12 }
  0x3a   :  { %v243_v14 = vpop.eup %242 }
  0x3b   :  { %248 = vrcp.f32 %v183_v13  ;;  %v184_v15 = vadd.f32 1.0, %v243_v14 }
  0x3c   :  { %v245_v17 = vpop.eup %244 }
  0x3d   :  { %250 = vrcp.f32 %v184_v15  ;;  %v185_v43 = vadd.f32 1.0, %v245_v17 }
  0x3f   :  { %v247_v18 = vpop.eup %246  ;;  %252 = vrcp.f32 %v185_v43 }
  0x40   :  { %v186_v49 = vadd.f32 1.0, %v247_v18 }
  0x42   :  { %254 = vrcp.f32 %v186_v49 }
  0x45   :  { %v249_v19 = vpop.eup %248 }
  0x46   :  { %196 = vst.msk [vmem:[%s504_s3] sm:$0xff] %vm195_vm0, %v249_v19 }
  0x47   :  { %v251_v2 = vpop.eup %250 }
  0x48   :  { %197 = vst.msk [vmem:[%s504_s3 + $0x8] sm:$0xff] %vm195_vm0, %v251_v2 }
  0x49   :  { %v253_v8 = vpop.eup %252 }
  0x4a   :  { %198 = vst.msk [vmem:[%s504_s3 + $0x10] sm:$0xff] %vm195_vm0, %v253_v8 }
  0x4c   :  { %v255_v21 = vpop.eup %254 }
  0x4d   :  { %200 = vst.msk [vmem:[%s504_s3 + $0x18] sm:$0x7] %vm199_vm1, %v255_v21 }
  0x4e   :  { %205 = vsyncpa [#allocation4], 1 }

</bundles_post_ra>
